<compile_context>
chip_gen: v5e
topology: v5e:2x2
jax: 0.10.0
libtpu: 0.0.40
codegen_flags: <defaults>
</compile_context>

<pallas_src>
import math

import jax
import jax.numpy as jnp
from jax.experimental import pallas as pl
from jax.experimental.pallas import tpu as pltpu


def _round_up(x: int, m: int) -> int:
    return ((x + m - 1) // m) * m


def _sublane(dtype) -> int:
    # vreg sublane packing: 8 rows for 4-byte, 16 for 2-byte, 32 for 1-byte dtypes.
    return max(8, 32 // jnp.dtype(dtype).itemsize)


def _lora_kernel(x_ref, a_ref, b_ref, o_ref, t_ref):
    # x_ref : (tile_m, in)      activation tile, streamed over M (double-buffered)
    # a_ref : (in, rank)        pre-transposed, pre-scaled A (VMEM-resident)
    # b_ref : (rank, tile_n)    pre-transposed B tile (resident, or streamed over N)
    # o_ref : (tile_m, tile_n)  output tile
    # t_ref : (tile_m, rank)    f32 scratch: first dot, reused across the N axis
    @pl.when(pl.program_id(1) == 0)
    def _():
        # (tile_m, in) @ (in, rank) on the MXU, f32 accumulation. alpha/rank is
        # already folded into a_ref, so no per-tile scale is needed.
        t_ref[...] = jnp.dot(x_ref[...], a_ref[...],
                             preferred_element_type=jnp.float32)

    # (tile_m, rank) @ (rank, tile_n) on the MXU, f32 accumulation. Feed the
    # second dot in the weight dtype (keeps the bf16 MXU path when weights are bf16).
    t = t_ref[...].astype(b_ref.dtype)
    o_ref[...] = jnp.dot(t, b_ref[...],
                         preferred_element_type=jnp.float32).astype(o_ref.dtype)


def prepare_lora_weights(lora_A, lora_B, alpha, *, dtype=None):
    """One-time transform of PyTorch-layout LoRA weights.

    lora_A: (rank, in_features), lora_B: (out_features, rank)  (PyTorch layout)
    Returns (a_t, b_t) with a_t: (in_features, rank) including the alpha/rank
    scale (folded in f32, then cast), b_t: (rank, out_features).
    Store / jit-close-over these so no per-forward transpose or scale is emitted.
    """
    rank = lora_A.shape[0]
    scaling = alpha / rank
    dtype = dtype or lora_A.dtype
    a_t = (jnp.transpose(lora_A).astype(jnp.float32) * scaling).astype(dtype)
    b_t = jnp.transpose(lora_B).astype(dtype)
    return a_t, b_t


def lora_forward(x, a_t, b_t, *, tile_m=512, tile_n=None, out_dtype=None,
                 vmem_budget_bytes=48 * 1024 * 1024):
    """x: (..., in_features) -> (..., out_features).

    a_t: (in_features, rank) pre-scaled, b_t: (rank, out_features)
    (from prepare_lora_weights). On v7x/v6e pass tile_m=1024 for peak HBM BW.
    """
    in_features, rank = a_t.shape
    rank_b, out_features = b_t.shape
    assert rank == rank_b, (rank, rank_b)
    assert x.shape[-1] == in_features, (x.shape, in_features)

    # TODO(synk): nn.Dropout is stochastic in train mode; this kernel implements
    # the deterministic eval-mode (identity) forward. Train-mode dropout would
    # need pltpu.prng_seed / pltpu.prng_random_bits inside the kernel.

    # Keep activations and weights in one dtype (mixed dtypes would silently
    # promote the first dot). Weights should ideally be stored pre-cast.
    if a_t.dtype != x.dtype:
        a_t = a_t.astype(x.dtype)
    if b_t.dtype != x.dtype:
        b_t = b_t.astype(x.dtype)
    out_dtype = out_dtype or x.dtype

    lead_shape = x.shape[:-1]
    M = int(math.prod(lead_shape)) if lead_shape else 1
    x2d = x.reshape(M, in_features)

    # ---- Tile selection -------------------------------------------------
    sub = _sublane(x.dtype)

    # N tiling: keep out_features whole unless it is huge (multiple of 128 lanes
    # otherwise); the ragged last N tile (if any) uses masked writeback.
    if tile_n is None:
        tile_n = out_features if out_features <= 4096 else 4096
    else:
        tile_n = min(int(tile_n), out_features)
        if tile_n != out_features:
            tile_n = max(128, _round_up(tile_n, 128))
    n_steps = pl.cdiv(out_features, tile_n)

    # M tiling: sublane-packed, no larger than (rounded-up) M.
    tile_m = max(sub, min(int(tile_m), _round_up(M, sub)))
    tile_m = _round_up(tile_m, sub)
    # Give the v7x megacore at least 2 M-steps to shard when M allows it.
    if pl.cdiv(M, tile_m) < 2 and M >= 2 * sub:
        tile_m = _round_up(pl.cdiv(M, 2), sub)

    x_item = jnp.dtype(x2d.dtype).itemsize
    w_item = jnp.dtype(a_t.dtype).itemsize
    o_item = jnp.dtype(out_dtype).itemsize

    # Constant-index weight blocks don't need Pallas's default double buffer;
    # only bother overriding when the weights are big enough to matter.
    big_weights = (a_t.size + b_t.size) * w_item > (4 << 20)
    a_bufs = 1 if big_weights else 2
    b_bufs = 1 if (big_weights and n_steps == 1) else 2

    def _footprint(tm):
        return (2 * tm * in_features * x_item          # x, double-buffered
                + 2 * tm * tile_n * o_item             # out, double-buffered
                + a_bufs * in_features * rank * w_item
                + b_bufs * rank * tile_n * w_item
                + tm * rank * 4)                       # f32 scratch

    # Shrink tile_m until the footprint fits the (v7x-safe) VMEM budget.
    while _footprint(tile_m) > vmem_budget_bytes and tile_m > sub:
        tile_m = max(sub, _round_up(tile_m // 2, sub))

    vmem_limit = int(min(64 << 20,
                         max(_footprint(tile_m) * 5 // 4 + (1 << 20), 16 << 20)))

    m_steps = pl.cdiv(M, tile_m)
    grid = (m_steps, n_steps)

    a_spec_kwargs = {}
    b_spec_kwargs = {}
    if big_weights:
        a_spec_kwargs = dict(pipeline_mode=pl.Buffered(1))
        if n_steps == 1:
            b_spec_kwargs = dict(pipeline_mode=pl.Buffered(1))

    in_specs = [
        # Activation tile: streams over M; index constant in j so it is not
        # re-DMA'd while sweeping N. (If profiling on v7x shows exposed input
        # DMA, sweep pipeline_mode=pl.Buffered(3) here.)
        pl.BlockSpec((tile_m, in_features), lambda i, j: (i, 0)),
        # Weights: constant / N-streamed blocks stay resident in VMEM.
        pl.BlockSpec((in_features, rank), lambda i, j: (0, 0), **a_spec_kwargs),
        pl.BlockSpec((rank, tile_n), lambda i, j: (0, j), **b_spec_kwargs),
    ]
    out_specs = pl.BlockSpec((tile_m, tile_n), lambda i, j: (i, j))

    cost = pl.CostEstimate(
        flops=2 * M * rank * (in_features + out_features),
        transcendentals=0,
        bytes_accessed=M * in_features * x_item + M * out_features * o_item
        + (a_t.size + b_t.size) * w_item,
    )

    out = pl.pallas_call(
        _lora_kernel,
        out_shape=jax.ShapeDtypeStruct((M, out_features), out_dtype),
        grid_spec=pltpu.PrefetchScalarGridSpec(
            num_scalar_prefetch=0,
            grid=grid,
            in_specs=in_specs,
            out_specs=out_specs,
            scratch_shapes=[pltpu.VMEM((tile_m, rank), jnp.float32)],
        ),
        compiler_params=pltpu.CompilerParams(
            # M tiles are independent ("parallel" -> v7x megacore sharding,
            # harmless on single-TC v5e/v6e); N sweeps reuse the scratch, so
            # it must stay "arbitrary" (sequential, innermost).
            dimension_semantics=("parallel", "arbitrary"),
            vmem_limit_bytes=vmem_limit,
        ),
        cost_estimate=cost,
    )(x2d, a_t, b_t)

    return out.reshape(*lead_shape, out_features)


def init_lora_params(key, in_features, out_features, rank, dtype=jnp.float32):
    # nn.init.kaiming_uniform_(lora_A, a=sqrt(5)):
    #   gain  = sqrt(2 / (1 + a^2)) = sqrt(2/6)
    #   bound = gain * sqrt(3 / fan_in) = 1 / sqrt(fan_in),  fan_in = in_features
    bound = 1.0 / math.sqrt(in_features)
    lora_A = jax.random.uniform(
        key, (rank, in_features), dtype=dtype, minval=-bound, maxval=bound
    )
    # nn.init.zeros_(lora_B)
    lora_B = jnp.zeros((out_features, rank), dtype=dtype)
    return lora_A, lora_B


def lora_ref(x, lora_A, lora_B, alpha):
    rank = lora_A.shape[0]
    scaling = alpha / rank
    return (x @ lora_A.T) @ lora_B.T * scaling


if __name__ == "__main__":
    batch, seq = 2, 8
    in_features, out_features, rank, alpha = 32, 32, 16, 32.0

    key = jax.random.PRNGKey(0)
    k_x, k_a, k_b = jax.random.split(key, 3)

    x = jax.random.normal(k_x, (batch, seq, in_features), dtype=jnp.float32)
    lora_A, lora_B = init_lora_params(k_a, in_features, out_features, rank)
    # lora_B is zero-initialized (faithful to PyTorch), which makes the output
    # trivially zero — use a random B here so the numerical check is meaningful.
    lora_B = 0.1 * jax.random.normal(k_b, (out_features, rank), dtype=jnp.float32)

    # f32 path (tight tolerance). Weights prepared once (transpose + scale fold).
    a_t, b_t = prepare_lora_weights(lora_A, lora_B, alpha)
    out = jax.block_until_ready(lora_forward(x, a_t, b_t))
    ref = lora_ref(x, lora_A, lora_B, alpha)
    assert out.shape == (batch, seq, out_features), out.shape
    assert jnp.allclose(out, ref, atol=1e-5, rtol=1e-5), "f32 mismatch vs reference"

    # Ragged-M path (M not a multiple of the tile): exercises masked writeback.
    x_odd = x[:, :5, :]  # M = 10
    out_odd = jax.block_until_ready(lora_forward(x_odd, a_t, b_t))
    ref_odd = lora_ref(x_odd, lora_A, lora_B, alpha)
    assert out_odd.shape == (batch, 5, out_features), out_odd.shape
    assert jnp.allclose(out_odd, ref_odd, atol=1e-5, rtol=1e-5), "ragged-M mismatch"

    # bf16 path (halves HBM traffic on realistic shapes; looser tolerance).
    x_bf = x.astype(jnp.bfloat16)
    a_bf, b_bf = prepare_lora_weights(
        lora_A.astype(jnp.bfloat16), lora_B.astype(jnp.bfloat16), alpha
    )
    out_bf = jax.block_until_ready(lora_forward(x_bf, a_bf, b_bf))
    ref_bf = lora_ref(
        x_bf.astype(jnp.float32),
        lora_A.astype(jnp.bfloat16).astype(jnp.float32),
        lora_B.astype(jnp.bfloat16).astype(jnp.float32),
        alpha,
    )
    assert out_bf.shape == (batch, seq, out_features), out_bf.shape
    assert jnp.allclose(
        out_bf.astype(jnp.float32), ref_bf, atol=5e-2, rtol=5e-2
    ), "bf16 mismatch vs reference"

    print("KERNEL_OK")
</pallas_src>

<mosaic_0001>
module attributes {stable_mosaic.version = 11 : i64} {
  func.func @_lora_kernel(%arg0: i32, %arg1: i32, %arg2: memref<8x32xf32, #tpu.memory_space<vmem>>, %arg3: memref<32x16xf32, #tpu.memory_space<vmem>>, %arg4: memref<16x32xf32, #tpu.memory_space<vmem>>, %arg5: memref<8x32xf32, #tpu.memory_space<vmem>>, %arg6: memref<8x16xf32, #tpu.memory_space<vmem>>) attributes {dimension_semantics = [#tpu.dimension_semantics<parallel>, #tpu.dimension_semantics<arbitrary>], iteration_bounds = array<i64: 2, 1>, scalar_prefetch = 0 : i64, scratch_operands = 1 : i64, tpu.core_type = #tpu.core_type<tc>, window_params = [{transform_indices = @transform_0, window_bounds = array<i64: 8, 32>}, {pipeline_mode = #tpu.pipeline_mode<synchronous>, transform_indices = @transform_1, window_bounds = array<i64: 32, 16>}, {transform_indices = @transform_2, window_bounds = array<i64: 16, 32>}, {transform_indices = @transform_3, window_bounds = array<i64: 8, 32>}]} {
    %c0_i32 = arith.constant 0 : i32
    %0 = arith.cmpi eq, %arg1, %c0_i32 : i32
    %1 = arith.extui %0 : i1 to i32
    %c0_i32_0 = arith.constant 0 : i32
    %2 = arith.cmpi ne, %1, %c0_i32_0 : i32
    scf.if %2 {
      %c0_6 = arith.constant 0 : index
      %c0_7 = arith.constant 0 : index
      %7 = vector.load %arg2[%c0_6, %c0_7] : memref<8x32xf32, #tpu.memory_space<vmem>>, vector<8x32xf32>
      %c0_8 = arith.constant 0 : index
      %c0_9 = arith.constant 0 : index
      %8 = vector.load %arg3[%c0_8, %c0_9] : memref<32x16xf32, #tpu.memory_space<vmem>>, vector<32x16xf32>
      %cst_10 = arith.constant dense<0.000000e+00> : vector<8x16xf32>
      %9 = tpu.matmul %7, %8, %cst_10 {dimension_numbers = #tpu.dot_dimension_numbers<[1], [0], [0], [1], [0, 0, 1, 1], [], []>} : vector<8x32xf32>, vector<32x16xf32>, vector<8x16xf32> -> vector<8x16xf32>
      %c0_11 = arith.constant 0 : index
      %c0_12 = arith.constant 0 : index
      %10 = vector.load %arg6[%c0_11, %c0_12] : memref<8x16xf32, #tpu.memory_space<vmem>>, vector<8x16xf32>
      tpu.vector_store %arg6[%c0_11, %c0_12], %9 {strides = array<i32>} : memref<8x16xf32, #tpu.memory_space<vmem>>, vector<8x16xf32>,
    } else {
    }
    %c0 = arith.constant 0 : index
    %c0_1 = arith.constant 0 : index
    %3 = vector.load %arg6[%c0, %c0_1] : memref<8x16xf32, #tpu.memory_space<vmem>>, vector<8x16xf32>
    %c0_2 = arith.constant 0 : index
    %c0_3 = arith.constant 0 : index
    %4 = vector.load %arg4[%c0_2, %c0_3] : memref<16x32xf32, #tpu.memory_space<vmem>>, vector<16x32xf32>
    %cst = arith.constant dense<0.000000e+00> : vector<8x32xf32>
    %5 = tpu.matmul %3, %4, %cst {dimension_numbers = #tpu.dot_dimension_numbers<[1], [0], [0], [1], [0, 0, 1, 1], [], []>} : vector<8x16xf32>, vector<16x32xf32>, vector<8x32xf32> -> vector<8x32xf32>
    %c0_4 = arith.constant 0 : index
    %c0_5 = arith.constant 0 : index
    %6 = vector.load %arg5[%c0_4, %c0_5] : memref<8x32xf32, #tpu.memory_space<vmem>>, vector<8x32xf32>
    tpu.vector_store %arg5[%c0_4, %c0_5], %5 {strides = array<i32>} : memref<8x32xf32, #tpu.memory_space<vmem>>, vector<8x32xf32>,
    return
  }
  func.func @transform_0(%arg0: i32, %arg1: i32) -> (i32, i32) {
    %c0_i32 = arith.constant 0 : i32
    %c0_i32_0 = arith.constant 0 : i32
    return %arg0, %c0_i32 : i32, i32
  }
  func.func @transform_1(%arg0: i32, %arg1: i32) -> (i32, i32) {
    %c0_i32 = arith.constant 0 : i32
    %c0_i32_0 = arith.constant 0 : i32
    %c0_i32_1 = arith.constant 0 : i32
    return %c0_i32, %c0_i32_0 : i32, i32
  }
  func.func @transform_2(%arg0: i32, %arg1: i32) -> (i32, i32) {
    %c0_i32 = arith.constant 0 : i32
    %c0_i32_0 = arith.constant 0 : i32
    return %c0_i32, %arg1 : i32, i32
  }
  func.func @transform_3(%arg0: i32, %arg1: i32) -> (i32, i32) {
    %c0_i32 = arith.constant 0 : i32
    return %arg0, %arg1 : i32, i32
  }
}

</mosaic_0001>

<bundles_post_ra>
// kernel: tpu_custom_call.1
= control target key start
LH: loop header
LB: loop body
LE: loop exit
PB: predicated region body
PF: predicated region fallthrough
CT: control target
= control target key end

     0   :  { %8 = vsyncpa [#allocation4], 0  ;;  %s647_s0 = inlined_call_operand.vmem [shape: f32[16,32], index: 0, kind: input, shape index: {}]   ;;  %s648_s1 = inlined_call_operand.vmem [shape: f32[32,16], index: 1, kind: input, shape index: {}]   ;;  %s649_s2 = inlined_call_operand.vmem [shape: f32[16,32], index: 2, kind: input, shape index: {}]   ;;  %s650_s3 = inlined_call_operand.hbm [shape: f32[16,32], index: 3, kind: output, shape index: {}]  }
   0x1   :  { %10 = vsyncpa [#allocation4 + $0x1], 0  ;;  %s530_s12 = smov 0   ;;  %s532_s13 = smov 0  }
   0x2   :  { %s534_s14 = smov 0   ;;  %s536_s15 = smov 0  }
   0x3   :  { %s538_s16 = smov 0   ;;  %s540_s17 = smov 0  }
   0x4 LB: > { %s361_s18 = sadd.s32 4294967295, %s508_s17   ;;  %s362_s19 = sadd.s32 4294967294, %s508_s17   ;;  %s508_s17 = sphi %s540_s17, %s16_s17   ;;  %s504_s16 = sphi %s538_s16, %s657_s16   ;;  %s500_s15 = sphi %s536_s15, %s656_s15   ;;  %s496_s14 = sphi %s534_s14, %s655_s14   ;;  %s492_s13 = sphi %s532_s13, %s654_s13   ;;  %s488_s12 = sphi %s530_s12, %s653_s12  }
   0x5   : > { %s28_s20 = sadd.s32 1, %s504_s16  ;;  %s110_s21 = sadd.s32 1, %s496_s14 }
   0x6   : > { %p30_p0 = scmp.ge.s32.totalorder %s28_s20, 2  ;;  %p120_p1 = scmp.ne.s32.totalorder %s496_s14, %s492_s13 }
   0x7   : > { %p121_p2 = scmp.eq.s32.totalorder %s361_s18, 1  ;;  %p126_p3 = scmp.ne.s32.totalorder %s492_s13, %s488_s12 }
   0x8   : > { %s659_s20 = smov (%p30_p0, %s28_s20), 0  ;;  %p127_p5 = scmp.eq.s32.totalorder %s362_s19, 1 }
   0x9   : > { %p570_p4 = por %p121_p2, %p120_p1  ;;  %s105_s23 = ssub.s32 %s504_s16, %s659_s20 }
   0xa   : > { %p366_p6 = scmp.ge.s32.totalorder %s508_s17, 1  ;;  %p108_p7 = scmp.eq.s32.totalorder %s105_s23, 0 }
   0xb   : > { %p577_p8 = por %p127_p5, %p126_p3  ;;  %p162_p9 = scmp.lt.s32.totalorder %s508_s17, 3 }
   0xc   : > { %s583_s25 = scalar_select %p108_p7, %s496_s14, %s110_s21  }
   0xd   : > { %p163_p10 = pnand %p366_p6, %p162_p9 }
   0xe   : > { %p189_p11 = scmp.lt.s32.totalorder (!%p163_p10), %s500_s15, 1  ;;  %s186_s26 = sand.u32 (!%p163_p10), 1, %s492_s13  }
   0xf   : > { %166 = sbr.rel (%p163_p10) target bundleno = 291 (0x123), region = 32  ;;  %s367_s27 = sshll.u32 (!%p163_p10), %s186_s26, 3 }
  0x10   : > { %s372_s28 = sshll.u32 (!%p163_p10), %s500_s15, 3  ;;  %s450_s18 = scalar_lea.hbm (!%p163_p10), %s650_s3, 16 }
  0x11   : > { %s273_s4 = scalar_lea.hbm (!%p163_p10), %s650_s3, %s372_s28 }
  0x12   : > { %s277_s7 = sshll.u32 (!%p163_p10), %s273_s4, 4  ;;  %s278_s7 = int_to_ptr.hbm [resolvable:$true] %s277_s7 }
  0x13   : > { %s444_s9 = sshra.s32 (!%p163_p10), %s278_s7, 4  ;;  %s445_s9 = int_to_ptr.hbm [resolvable:$true] %s444_s9 }
  0x14   : > { %v205_v0 = vld [vmem:[%s648_s1 + $0x18] sm:$0xff]  ;;  %v204_v1 = vld [vmem:[%s648_s1 + $0x10] sm:$0xff]  ;;  %v203_v2 = vld [vmem:[%s648_s1 + $0x8] sm:$0xff]  ;;  %s190_s5 = scalar_select %p189_p11, %s500_s15, 1  ;;  %vm206_vm0 = vcmask 261120   ;;  %vm230_vm1 = vcmask 130048  }
  0x15   : > { %222 = vmatpush.msra.mxu0 %v205_v0  ;;  %v202_v3 = vld [vmem:[%s648_s1] sm:$0xff]  ;;  %v234_v5 = vld [vmem:[%s649_s2 + $0x8] sm:$0xff]  ;;  %s446_s10 = scalar_lea.hbm %s445_s9, 8  ;;  %p451_p1 = scmp.lt.s32.totalorder %s445_s9, %s650_s3 }
  0x16   : > { %s368_s8 = sshll.u32 %s190_s5, 3  ;;  %v233_v6 = vld [vmem:[%s649_s2] sm:$0xff]  ;;  %253 = vmatpush.msra.mxu1 %v234_v5  ;;  %s188_s5 = scalar_lea.vmem [#allocation3], %s367_s27 }
  0x17   : > { %223 = vmatpush.msra.mxu0 %v204_v1  ;;  %s192_s11 = scalar_lea.vmem %s647_s0, %s368_s8  ;;  %s275_s6 = sshll.u32 %s188_s5, 4  ;;  %s276_s6 = int_to_ptr.vmem [resolvable:$true] %s275_s6 }
  0x18   : > { %v201_v4 = vld [vmem:[%s192_s11] sm:$0xff]  ;;  %254 = vmatpush.msra.mxu1 %v233_v6  ;;  %s262_s8 = scalar_lea.sflag [#allocation4], %s186_s26  ;;  %p447_p12 = scmp.ne.s32.totalorder %s445_s9, %s446_s10 }
  0x19   : > { %224 = vmatpush.msra.mxu0 %v203_v2  ;;  %p452_p2 = scmp.lt.s32.totalorder %s450_s18, %s446_s10 }
  0x1a   : > { %p448_p13 = pnand %p447_p12, %p570_p4 }
  0x1b   : > { %225 = vmatpush.msra.mxu0 %v202_v3  ;;  %p453_p3 = por %p452_p2, %p451_p1 }
  0x1c   : > { %369 = vmatmul.msk.f32.vlgmr.msra.gmra.mxu0 %vm206_vm0, %v201_v4  ;;  %p449_p0 = pneg %p448_p13 }
  0x1e   : > { %p454_p5 = pnand %p453_p3, %p449_p0 }
  0x99   : > { %v227_v7 = vpop.f32.mrf.mxu0 }
  0x9a   : > { %231 = vst.msk [vmem:[#allocation2] sm:$0xff] %vm230_vm1, %v227_v7 }
  0xa1   : > { %v232_v8 = vld [vmem:[#allocation2] sm:$0xff] }
  0xa2   : > { %370 = vmatmul.msk.f32.vlgmr.msra.gmra.mxu1 %vm230_vm1, %v232_v8 }
 0x11f   : > { %v256_v9 = vpop.f32.mrf.mxu1 }
 0x120   : > { %260 = vst.msk [vmem:[%s188_s5] sm:$0xff] %vm206_vm0, %v256_v9 }
 0x121   : > { %457 = shalt.err (!%p454_p5)
}
 0x122   : > { %375 = dma.vmem_to_hbm [thread:$0]  (%p570_p4), %s276_s6, 128, %s278_s7, %s262_s8  }
 0x123 PF: > { %p381_p6 = scmp.ge.s32.totalorder %s508_s17, 2  ;;  %s289_s23 = sand.u32 1, %s488_s12  }
 0x124   : > { %s290_s26 = scalar_lea.sflag [#allocation4], %s289_s23 }
 0x125   : > { %p378_p7 = pnand %p381_p6, %p577_p8 }
 0x127   : > { %p379_p9 = pneg %p378_p7 }
 0x129   : > { %483 = dma.done.wait (%p379_p9), %s290_s26, 128  }
 0x12a   : > { %485 = vsyncadd (%p379_p9), %s290_s26, 4294967168  ;;  %s16_s17 = sadd.s32 1, %s508_s17   ;;  %s653_s12 = smov %s492_s13 }
 0x12b   : > { %p13_p10 = scmp.ge.s32.totalorder %s16_s17, 4   ;;  %s654_s13 = smov %s496_s14 }
 0x12c   : > { %s655_s14 = smov %s583_s25  ;;  %s656_s15 = smov %s504_s16 }
 0x12d   : > { %s657_s16 = smov %s659_s20  ;;  %15 = sbr.rel (!%p13_p10) target bundleno = 4 (0x4), region = 74 }
 0x132   :  { %296 = vsyncpa [#allocation4], 1 }
 0x133   :  { %298 = vsyncpa [#allocation4 + $0x1], 1 }

</bundles_post_ra>
